<compile_context>
chip_gen: v5e
topology: v5e:2x2
jax: 0.10.0
libtpu: 0.0.40
codegen_flags: <defaults>
</compile_context>

<pallas_src>
import functools

import jax
import jax.numpy as jnp
from jax import lax
from jax.experimental import pallas as pl
from jax.experimental.pallas import tpu as pltpu

_LANE = 128
_SUBLANE = 8
_NEG = -1e9            # pad-column fill: exp(-1e9 - row_max) == 0 in f32
_DEFAULT_TILE_BT = 1024


def _round_up(x, m):
    return (x + m - 1) // m * m


def _train_kernel(ids_ref, table_ref, logits_ref, loss_ref, *, bt_actual):
    """One (TILE_BT, V_pad) logits tile + this tile's cross-entropy partial sum.

    ids_ref    : (TILE_BT, 2)     int32   col 0 = token ids, col 1 = targets
    table_ref  : (V_pad, V_pad)   float32 lane-padded embedding table (resident)
    logits_ref : (TILE_BT, V_pad) float32 lane-dense logits tile
    loss_ref   : (1, 1)           float32 SMEM, per-tile partial CE sum
    """
    i = pl.program_id(0)
    tile_bt = ids_ref.shape[0]
    v_pad = table_ref.shape[1]

    idx = ids_ref[:, 0:1]                                     # (TILE_BT, 1)
    tgt = ids_ref[:, 1:2]                                     # (TILE_BT, 1)
    vocab_iota = lax.broadcasted_iota(jnp.int32, (tile_bt, v_pad), 1)

    # Embedding gather as one-hot @ table on the MXU (K and N lane-padded).
    onehot_idx = (vocab_iota == idx).astype(jnp.float32)      # (TILE_BT, V_pad)
    logits = jnp.dot(onehot_idx, table_ref[...],
                     preferred_element_type=jnp.float32)      # (TILE_BT, V_pad)
    logits_ref[...] = logits

    # Cross-entropy: logsumexp(logits) - logits[target].  Pad columns carry
    # -1e9, so they contribute exactly 0 to the exp-sum and never win the max.
    row_max = jnp.max(logits, axis=-1, keepdims=True)                    # (TILE_BT, 1)
    lse = jnp.log(jnp.sum(jnp.exp(logits - row_max), axis=-1,
                          keepdims=True)) + row_max
    tgt_logit = jnp.sum(jnp.where(vocab_iota == tgt, logits, 0.0),
                        axis=-1, keepdims=True)                          # (TILE_BT, 1)
    per_row = lse - tgt_logit                                            # (TILE_BT, 1)

    # Zero out padded B*T rows so they don't pollute the sum.
    row_ids = i * tile_bt + lax.broadcasted_iota(jnp.int32, (tile_bt, 1), 0)
    per_row = jnp.where(row_ids < bt_actual, per_row, 0.0)

    # Per-tile partial sum (no cross-step dependency -> grid axis is parallel).
    loss_ref[0, 0] = jnp.sum(per_row)


def _infer_kernel(idx_ref, table_ref, logits_ref):
    """Inference variant: embedding lookup only (no targets, no loss)."""
    tile_bt = idx_ref.shape[0]
    v_pad = table_ref.shape[1]
    vocab_iota = lax.broadcasted_iota(jnp.int32, (tile_bt, v_pad), 1)
    onehot_idx = (vocab_iota == idx_ref[...]).astype(jnp.float32)
    logits_ref[...] = jnp.dot(onehot_idx, table_ref[...],
                              preferred_element_type=jnp.float32)


def _pad_table(table, v_pad):
    v = table.shape[0]
    t = jnp.pad(table.astype(jnp.float32), ((0, v_pad - v), (0, v_pad - v)))
    if v_pad > v:
        # Pad columns get a large negative so padded logits vanish in the CE.
        t = t.at[:v, v:].set(jnp.float32(_NEG))
    return t


def _pad_rows(x, rows_pad):
    rows = x.shape[0]
    return jnp.pad(x.astype(jnp.int32), ((0, rows_pad - rows), (0, 0)))


@functools.partial(jax.jit, static_argnames=("pad_logits",))
def bigram_forward(idx, table, targets=None, *, pad_logits=False):
    """Mirrors BigramLanguageModel.forward.

    idx     : (B, T) int32
    table   : (V, V) float32  (nn.Embedding weight, also the logit weights)
    targets : (B, T) int32 or None

    pad_logits=False (default, PyTorch semantics):
      targets given -> logits (B*T, V)  + scalar mean cross-entropy
      targets None  -> logits (B, T, V) + None
    pad_logits=True (fast path, skips the post-kernel HBM slice copy):
      logits returned padded to (BT_pad, V_pad); valid data in [:B*T, :V].
    """
    B, T = idx.shape
    V = table.shape[0]
    bt = B * T

    v_pad = _round_up(V, _LANE)
    tile_bt = min(_DEFAULT_TILE_BT, _round_up(bt, _SUBLANE))
    bt_pad = _round_up(bt, tile_bt)
    n_tiles = bt_pad // tile_bt

    table_p = _pad_table(table, v_pad)

    if targets is None:
        idx_p = _pad_rows(idx.reshape(bt, 1), bt_pad)
        logits_p = pl.pallas_call(
            _infer_kernel,
            grid=(n_tiles,),
            out_shape=jax.ShapeDtypeStruct((bt_pad, v_pad), jnp.float32),
            in_specs=[
                pl.BlockSpec((tile_bt, 1), lambda i: (i, 0)),
                pl.BlockSpec((v_pad, v_pad), lambda i: (0, 0)),
            ],
            out_specs=pl.BlockSpec((tile_bt, v_pad), lambda i: (i, 0)),
            compiler_params=pltpu.CompilerParams(
                dimension_semantics=("parallel",)),
        )(idx_p, table_p)
        if pad_logits:
            return logits_p, None
        return logits_p[:bt, :V].reshape(B, T, V), None

    # Training path: idx and targets stacked into one input (one DMA per step).
    ids = jnp.concatenate(
        [idx.reshape(bt, 1).astype(jnp.int32),
         targets.reshape(bt, 1).astype(jnp.int32)], axis=1)      # (BT, 2)
    ids_p = _pad_rows(ids, bt_pad)                               # (BT_pad, 2)

    logits_p, partials = pl.pallas_call(
        functools.partial(_train_kernel, bt_actual=bt),
        grid=(n_tiles,),
        out_shape=(
            jax.ShapeDtypeStruct((bt_pad, v_pad), jnp.float32),
            jax.ShapeDtypeStruct((n_tiles, 1), jnp.float32),
        ),
        in_specs=[
            pl.BlockSpec((tile_bt, 2), lambda i: (i, 0)),
            pl.BlockSpec((v_pad, v_pad), lambda i: (0, 0)),
        ],
        out_specs=(
            pl.BlockSpec((tile_bt, v_pad), lambda i: (i, 0)),
            pl.BlockSpec((1, 1), lambda i: (i, 0),
                         memory_space=pltpu.MemorySpace.SMEM),
        ),
        # Per-tile partial sums -> no cross-step reduction -> parallel grid
        # (sharded across both TensorCores on v7x).
        compiler_params=pltpu.CompilerParams(
            dimension_semantics=("parallel",)),
    )(ids_p, table_p)

    loss = jnp.sum(partials) * jnp.float32(1.0 / bt)
    if pad_logits:
        return logits_p, loss
    return logits_p[:bt, :V], loss


@jax.jit
def bigram_last_logits(idx, table):
    """Decode-time helper for generate(): logits of the last position only.

    idx : (B, T) int32 -> returns (B, V) float32 == forward(idx)[0][:, -1, :].
    Writes only (B_pad, V_pad) to HBM instead of (B, T, V).
    """
    B, _ = idx.shape
    V = table.shape[0]
    v_pad = _round_up(V, _LANE)
    b_pad = _round_up(B, _SUBLANE)

    table_p = _pad_table(table, v_pad)
    idx_last = _pad_rows(idx[:, -1:], b_pad)                    # (B_pad, 1)

    logits_p = pl.pallas_call(
        _infer_kernel,
        grid=(1,),
        out_shape=jax.ShapeDtypeStruct((b_pad, v_pad), jnp.float32),
        in_specs=[
            pl.BlockSpec((b_pad, 1), lambda i: (0, 0)),
            pl.BlockSpec((v_pad, v_pad), lambda i: (0, 0)),
        ],
        out_specs=pl.BlockSpec((b_pad, v_pad), lambda i: (0, 0)),
    )(idx_last, table_p)
    return logits_p[:B, :V]


if __name__ == "__main__":
    # Small deterministic example: vocab_size=65 (tiny-shakespeare charset),
    # batch=2, seq=8.
    V, B, T = 65, 2, 8
    key = jax.random.PRNGKey(0)
    k_tbl, k_idx, k_tgt = jax.random.split(key, 3)

    # nn.Embedding(vocab_size, vocab_size) initializes weights ~ N(0, 1).
    table = jax.random.normal(k_tbl, (V, V), dtype=jnp.float32)
    idx = jax.random.randint(k_idx, (B, T), 0, V, dtype=jnp.int32)
    targets = jax.random.randint(k_tgt, (B, T), 0, V, dtype=jnp.int32)

    # Pure-JAX reference for the kernel math.
    ref_logits = table[idx]                                   # (B, T, V)
    ref_flat = ref_logits.reshape(B * T, V)
    ref_lse = jax.scipy.special.logsumexp(ref_flat, axis=-1)
    ref_loss = jnp.mean(ref_lse - ref_flat[jnp.arange(B * T),
                                           targets.reshape(-1)])

    # Training path (targets given): PyTorch returns flattened (B*T, C) logits.
    logits, loss = bigram_forward(idx, table, targets)
    jax.block_until_ready((logits, loss))
    assert logits.shape == (B * T, V), "training logits shape mismatch"
    assert jnp.allclose(logits, ref_flat, atol=1e-5), "logits mismatch"
    assert jnp.allclose(loss, ref_loss, atol=1e-5), "loss mismatch"

    # Inference path (targets=None), as used by generate(): (B, T, V), no loss.
    logits_inf, no_loss = bigram_forward(idx, table)
    jax.block_until_ready(logits_inf)
    assert logits_inf.shape == (B, T, V), "inference logits shape mismatch"
    assert jnp.allclose(logits_inf, ref_logits, atol=1e-5), "inference logits mismatch"
    assert no_loss is None

    # Decode fast path: last-position logits only.
    last = bigram_last_logits(idx, table)
    jax.block_until_ready(last)
    assert last.shape == (B, V), "last-token logits shape mismatch"
    assert jnp.allclose(last, ref_logits[:, -1, :], atol=1e-5), \
        "last-token logits mismatch"

    # TODO(synk): torch.multinomial-based sampling loop of generate() is
    # host-side control flow, not implemented as a kernel.
    print("KERNEL_OK")
</pallas_src>

<mosaic_0001>
module attributes {stable_mosaic.version = 11 : i64} {
  func.func @_train_kernel(%arg0: i32, %arg1: memref<16x2xi32, #tpu.memory_space<vmem>>, %arg2: memref<128x128xf32, #tpu.memory_space<vmem>>, %arg3: memref<16x128xf32, #tpu.memory_space<vmem>>, %arg4: memref<1x1xf32, #tpu.memory_space<smem>>) attributes {dimension_semantics = [#tpu.dimension_semantics<parallel>], iteration_bounds = array<i64: 1>, scalar_prefetch = 0 : i64, scratch_operands = 0 : i64, tpu.core_type = #tpu.core_type<tc>, window_params = [{transform_indices = @transform_0, window_bounds = array<i64: 16, 2>}, {pipeline_mode = #tpu.pipeline_mode<synchronous>, transform_indices = @transform_1, window_bounds = array<i64: 128, 128>}, {transform_indices = @transform_2, window_bounds = array<i64: 16, 128>}, {transform_indices = @transform_3, window_bounds = array<i64: 1, 1>}]} {
    %c0 = arith.constant 0 : index
    %c0_0 = arith.constant 0 : index
    %0 = vector.load %arg1[%c0, %c0_0] : memref<16x2xi32, #tpu.memory_space<vmem>>, vector<16x1xi32>
    %c0_1 = arith.constant 0 : index
    %c1 = arith.constant 1 : index
    %1 = vector.load %arg1[%c0_1, %c1] : memref<16x2xi32, #tpu.memory_space<vmem>>, vector<16x1xi32>
    %2 = tpu.iota {dimensions = array<i32: 1>} : vector<16x128xi32>
    %3 = vector.broadcast %0 : vector<16x1xi32> to vector<16x128xi32>
    %4 = arith.cmpi eq, %2, %3 : vector<16x128xi32>
    %5 = arith.extui %4 : vector<16x128xi1> to vector<16x128xi32>
    %6 = arith.sitofp %5 : vector<16x128xi32> to vector<16x128xf32>
    %c0_2 = arith.constant 0 : index
    %c0_3 = arith.constant 0 : index
    %7 = vector.load %arg2[%c0_2, %c0_3] : memref<128x128xf32, #tpu.memory_space<vmem>>, vector<128x128xf32>
    %cst = arith.constant dense<0.000000e+00> : vector<16x128xf32>
    %8 = tpu.matmul %6, %7, %cst {dimension_numbers = #tpu.dot_dimension_numbers<[1], [0], [0], [1], [0, 0, 1, 1], [], []>} : vector<16x128xf32>, vector<128x128xf32>, vector<16x128xf32> -> vector<16x128xf32>
    %c0_4 = arith.constant 0 : index
    %c0_5 = arith.constant 0 : index
    %9 = vector.load %arg3[%c0_4, %c0_5] : memref<16x128xf32, #tpu.memory_space<vmem>>, vector<16x128xf32>
    tpu.vector_store %arg3[%c0_4, %c0_5], %8 {strides = array<i32>} : memref<16x128xf32, #tpu.memory_space<vmem>>, vector<16x128xf32>,
    %cst_6 = arith.constant dense<0xFF800000> : vector<16xf32>
    %10 = vector.multi_reduction <maximumf>, %8, %cst_6 [1] : vector<16x128xf32> to vector<16xf32>
    %11 = vector.shape_cast %10 : vector<16xf32> to vector<16x1xf32>
    %12 = vector.broadcast %11 : vector<16x1xf32> to vector<16x128xf32>
    %13 = arith.subf %8, %12 : vector<16x128xf32>
    %14 = math.exp %13 : vector<16x128xf32>
    %cst_7 = arith.constant dense<0.000000e+00> : vector<16xf32>
    %15 = vector.multi_reduction <add>, %14, %cst_7 [1] : vector<16x128xf32> to vector<16xf32>
    %16 = vector.shape_cast %15 : vector<16xf32> to vector<16x1xf32>
    %17 = math.log %16 : vector<16x1xf32>
    %18 = arith.addf %17, %11 : vector<16x1xf32>
    %19 = vector.broadcast %1 : vector<16x1xi32> to vector<16x128xi32>
    %20 = arith.cmpi eq, %2, %19 : vector<16x128xi32>
    %cst_8 = arith.constant 0.000000e+00 : f32
    %21 = vector.broadcast %cst_8 : f32 to vector<16x128xf32>
    %22 = arith.select %20, %8, %21 : vector<16x128xi1>, vector<16x128xf32>
    %cst_9 = arith.constant dense<0.000000e+00> : vector<16xf32>
    %23 = vector.multi_reduction <add>, %22, %cst_9 [1] : vector<16x128xf32> to vector<16xf32>
    %24 = vector.shape_cast %23 : vector<16xf32> to vector<16x1xf32>
    %25 = arith.subf %18, %24 : vector<16x1xf32>
    %c16_i32 = arith.constant 16 : i32
    %26 = arith.muli %arg0, %c16_i32 : i32
    %27 = tpu.iota {dimensions = array<i32: 0>} : vector<16x1xi32>
    %28 = vector.broadcast %26 : i32 to vector<16x1xi32>
    %29 = arith.addi %28, %27 : vector<16x1xi32>
    %c16_i32_10 = arith.constant 16 : i32
    %30 = vector.broadcast %c16_i32_10 : i32 to vector<16x1xi32>
    %31 = arith.cmpi slt, %29, %30 : vector<16x1xi32>
    %cst_11 = arith.constant 0.000000e+00 : f32
    %32 = vector.broadcast %cst_11 : f32 to vector<16x1xf32>
    %33 = arith.select %31, %25, %32 : vector<16x1xi1>, vector<16x1xf32>
    %34 = vector.shape_cast %33 : vector<16x1xf32> to vector<1x16x1xf32>
    %cst_12 = arith.constant dense<0.000000e+00> : vector<1xf32>
    %35 = vector.multi_reduction <add>, %34, %cst_12 [1, 2] : vector<1x16x1xf32> to vector<1xf32>
    %36 = vector.shape_cast %35 : vector<1xf32> to vector<1x1x1xf32>
    %37 = vector.extract %36[0, 0, 0] : f32 from vector<1x1x1xf32>
    %c0_13 = arith.constant 0 : index
    %c0_14 = arith.constant 0 : index
    %38 = memref.load %arg4[%c0_13, %c0_14] : memref<1x1xf32, #tpu.memory_space<smem>>
    memref.store %37, %arg4[%c0_13, %c0_14] : memref<1x1xf32, #tpu.memory_space<smem>>
    return
  }
  func.func @transform_0(%arg0: i32) -> (i32, i32) {
    %c0_i32 = arith.constant 0 : i32
    %c0_i32_0 = arith.constant 0 : i32
    return %arg0, %c0_i32 : i32, i32
  }
  func.func @transform_1(%arg0: i32) -> (i32, i32) {
    %c0_i32 = arith.constant 0 : i32
    %c0_i32_0 = arith.constant 0 : i32
    %c0_i32_1 = arith.constant 0 : i32
    return %c0_i32, %c0_i32_0 : i32, i32
  }
  func.func @transform_2(%arg0: i32) -> (i32, i32) {
    %c0_i32 = arith.constant 0 : i32
    %c0_i32_0 = arith.constant 0 : i32
    return %arg0, %c0_i32 : i32, i32
  }
  func.func @transform_3(%arg0: i32) -> (i32, i32) {
    %c0_i32 = arith.constant 0 : i32
    %c0_i32_0 = arith.constant 0 : i32
    return %arg0, %c0_i32 : i32, i32
  }
}

</mosaic_0001>

<bundles_post_ra>
// kernel: bigram_forward.1
= control target key start
LH: loop header
LB: loop body
LE: loop exit
PB: predicated region body
PF: predicated region fallthrough
CT: control target
= control target key end

     0   :  { %9 = vsyncpa [#allocation3], 0  ;;  %v247_v2 = vmov 0   ;;  %s334_s0 = inlined_call_operand.vmem [shape: s32[16,2], index: 0, kind: input, shape index: {}]   ;;  %s335_s1 = inlined_call_operand.vmem [shape: f32[128,128], index: 1, kind: input, shape index: {}]   ;;  %s336_s2 = inlined_call_operand.hbm [shape: f32[16,128], index: 2, kind: output, shape index: {0}]   ;;  %s337_s3 = inlined_call_operand.hbm [shape: f32[1,1], index: 3, kind: output, shape index: {1}]  }
   0x1   :  { %v15_v0 = vld [vmem:[%s334_s0] sm:$0xff]  ;;  %v46_v1 = vld [vmem:[%s335_s1 + $0x78] sm:$0xff]  ;;  %196 = vset.pattern.permute.xlu0 %v247_v2  ;;  %v45_v3 = vld [vmem:[%s335_s1 + $0x70] sm:$0xff] }
   0x2   :  { %47 = vmatpush.msra.mxu0 %v46_v1  ;;  %20 = vperm.xlu0 %196, %v15_v0   ;;  %v44_v4 = vld [vmem:[%s335_s1 + $0x68] sm:$0xff]  ;;  %v43_v5 = vld [vmem:[%s335_s1 + $0x60] sm:$0xff] }
   0x3   :  { %171 = vmatpush.msra.mxu1 %v46_v1 }
   0x4   :  { %48 = vmatpush.msra.mxu0 %v45_v3 }
   0x5   :  { %172 = vmatpush.msra.mxu1 %v45_v3 }
   0x6   :  { %49 = vmatpush.msra.mxu0 %v44_v4 }
   0x7   :  { %10 = vsyncpa [#allocation4], 0  ;;  %v42_v6 = vld [vmem:[%s335_s1 + $0x58] sm:$0xff]  ;;  %173 = vmatpush.msra.mxu1 %v44_v4  ;;  %v16_v7 = vld [vmem:[%s334_s0 + $0x8] sm:$0xff]  ;;  %v248_v19 = vmov 1   ;;  %v17_v20 = vlaneseq  ;;  %v249_v23 = vmov 1.0  }
   0x8   :  { %50 = vmatpush.msra.mxu0 %v43_v5  ;;  %v41_v8 = vld [vmem:[%s335_s1 + $0x50] sm:$0xff]  ;;  %v40_v9 = vld [vmem:[%s335_s1 + $0x48] sm:$0xff]  ;;  %v39_v10 = vld [vmem:[%s335_s1 + $0x40] sm:$0xff]  ;;  %197 = vset.pattern.permute.xlu2 %v248_v19  ;;  %vm119_vm4 = vcmask 7168   ;;  %s140_s23 = sshll.u32 %s336_s2, 4  ;;  %s251_s24 = smov 128   ;;  %s141_s23 = int_to_ptr.hbm [resolvable:$true] %s140_s23 }
   0x9   :  { %174 = vmatpush.msra.mxu1 %v43_v5  ;;  %v38_v11 = vld [vmem:[%s335_s1 + $0x38] sm:$0xff]  ;;  %v37_v12 = vld [vmem:[%s335_s1 + $0x30] sm:$0xff]  ;;  %v36_v13 = vld [vmem:[%s335_s1 + $0x28] sm:$0xff]  ;;  %93 = vperm.xlu2 %197, %v15_v0   ;;  %v18_v21 = vand.u32 127, %v17_v20  ;;  %s252_s25 = smov 8   ;;  %s152_s28 = sshll.u32 %s337_s3, 4  ;;  %s153_s28 = int_to_ptr.hbm [resolvable:$true] %s152_s28 }
   0xa   :  { %51 = vmatpush.msra.mxu0 %v42_v6  ;;  %23 = vperm.xlu0 %196, %v16_v7   ;;  %v35_v14 = vld [vmem:[%s335_s1 + $0x20] sm:$0xff]  ;;  %v34_v15 = vld [vmem:[%s335_s1 + $0x18] sm:$0xff]  ;;  %v33_v16 = vld [vmem:[%s335_s1 + $0x10] sm:$0xff]  ;;  %s253_s2 = smov [#allocation5]  }
   0xb   :  { %175 = vmatpush.msra.mxu1 %v42_v6  ;;  %v32_v17 = vld [vmem:[%s335_s1 + $0x8] sm:$0xff]  ;;  %v31_v18 = vld [vmem:[%s335_s1] sm:$0xff]  ;;  %s250_s1 = smov [#allocation2]  }
   0xc   :  { %52 = vmatpush.msra.mxu0 %v41_v8  ;;  %s138_s20 = sshll.u32 %s250_s1, 4  ;;  %s139_s20 = int_to_ptr.vmem [resolvable:$true] %s138_s20 }
   0xd   :  { %176 = vmatpush.msra.mxu1 %v41_v8 }
   0xe   :  { %53 = vmatpush.msra.mxu0 %v40_v9 }
   0xf   :  { %177 = vmatpush.msra.mxu1 %v40_v9 }
  0x10   :  { %54 = vmatpush.msra.mxu0 %v39_v10 }
  0x11   :  { %178 = vmatpush.msra.mxu1 %v39_v10  ;;  %96 = vperm.xlu2 %197, %v16_v7  }
  0x12   :  { %55 = vmatpush.msra.mxu0 %v38_v11  ;;  %198 = vset.pattern.permute.xlu0 %v248_v19 }
  0x13   :  { %179 = vmatpush.msra.mxu1 %v38_v11 }
  0x14   :  { %56 = vmatpush.msra.mxu0 %v37_v12 }
  0x15   :  { %180 = vmatpush.msra.mxu1 %v37_v12 }
  0x16   :  { %57 = vmatpush.msra.mxu0 %v36_v13 }
  0x17   :  { %181 = vmatpush.msra.mxu1 %v36_v13 }
  0x18   :  { %58 = vmatpush.msra.mxu0 %v35_v14 }
  0x19   :  { %182 = vmatpush.msra.mxu1 %v35_v14 }
  0x1a   :  { %59 = vmatpush.msra.mxu0 %v34_v15 }
  0x1b   :  { %183 = vmatpush.msra.mxu1 %v34_v15 }
  0x1c   :  { %60 = vmatpush.msra.mxu0 %v33_v16 }
  0x1d   :  { %184 = vmatpush.msra.mxu1 %v33_v16 }
  0x1e   :  { %61 = vmatpush.msra.mxu0 %v32_v17 }
  0x1f   :  { %185 = vmatpush.msra.mxu1 %v32_v17 }
  0x20   :  { %62 = vmatpush.msra.mxu0 %v31_v18 }
  0x21   :  { %186 = vmatpush.msra.mxu1 %v31_v18 }
  0x63   :  { %v94_v25 = vpop.permute.xlu2 %93 }
  0x64   :  { %vm98_vm2 = vcmp.eq.s32.totalorder %v18_v21, %v94_v25 }
  0x6b   :  { %v97_v37 = vpop.permute.xlu2 %96 }
  0x6c   :  { %vm99_vm3 = vcmp.eq.s32.totalorder %v18_v21, %v97_v37 }
  0x74   :  { %v21_v22 = vpop.permute.xlu0 %20 }
  0x75   :  { %vm25_vm0 = vcmp.eq.s32.totalorder %v18_v21, %v21_v22 }
  0x76   :  { %169 = vmatmul.msk.f32.vlgmr.msra.gmra.mxu0 %vm25_vm0, %v249_v23 }
  0x7c   :  { %v24_v24 = vpop.permute.xlu0 %23 }
  0x7d   :  { %vm26_vm1 = vcmp.eq.s32.totalorder %v18_v21, %v24_v24 }
  0x7e   :  { %170 = vmatmul.msk.f32.vlgmr.msra.gmra.mxu1 %vm26_vm1, %v249_v23 }
  0xf3   :  { %v64_v26 = vpop.f32.mrf.mxu0 }
  0xf4   :  { %70 = vst [vmem:[#allocation2] sm:$0xff] %v64_v26  ;;  %72 = vmax.xlane.f32.xlu1 %v64_v26  ;;  %v100_v27 = vsel %vm98_vm2, %v64_v26, 0.0 }
  0xf5   :  { %102 = vadd.xlane.f32.xlu2 %v100_v27 }
  0xfb   :  { %v67_v28 = vpop.f32.mrf.mxu1 }
  0xfc   :  { %71 = vst [vmem:[#allocation2 + $0x8] sm:$0xff] %v67_v28  ;;  %74 = vmax.xlane.f32.xlu1 %v67_v28  ;;  %v101_v38 = vsel %vm99_vm3, %v67_v28, 0.0 }
  0xfd   :  { %146 = dma.vmem_to_hbm [thread:$0]  %s139_s20, 256, %s141_s23, [#allocation3], %s251_s24, %s251_s24, %s252_s25  }
 0x167   :  { %v73_v29 = vpop.xlane.xlu1 %72 }
 0x168   :  { %v76_v30 = vsub.f32 %v64_v26, %v73_v29  ;;  %v103_v46 = vpop.xlane.xlu2 %102 }
 0x16a   :  { %v78_v31 = vmul.f32 1.442695, %v76_v30 }
 0x16c   :  { %199 = vpow2.f32 %v78_v31 }
 0x16f   :  { %v75_v32 = vpop.xlane.xlu1 %74 }
 0x170   :  { %v77_v33 = vsub.f32 %v67_v28, %v75_v32 }
 0x172   :  { %v200_v34 = vpop.eup %199  ;;  %v80_v35 = vmul.f32 1.442695, %v77_v33 }
 0x173   :  { %82 = vadd.xlane.f32.xlu0 %v200_v34 }
 0x174   :  { %201 = vpow2.f32 %v80_v35 }
 0x17a   :  { %v202_v36 = vpop.eup %201 }
 0x17b   :  { %84 = vadd.xlane.f32.xlu1 %v202_v36 }
 0x183   :  { %104 = vadd.xlane.f32.xlu1 %v101_v38 }
 0x1e6   :  { %v83_v39 = vpop.xlane.xlu0 %82 }
 0x1e7   :  { %203 = vlog2.f32 %v83_v39 }
 0x1ed   :  { %v204_v40 = vpop.eup %203 }
 0x1ee   :  { %v85_v41 = vpop.xlane.xlu1 %84  ;;  %v87_v42 = vmul.f32 0.6931472, %v204_v40 }
 0x1ef   :  { %205 = vlog2.f32 %v85_v41 }
 0x1f0   :  { %v90_v43 = vadd.f32 %v87_v42, %v73_v29 }
 0x1f2   :  { %v106_v48 = vsub.f32 %v90_v43, %v103_v46 }
 0x1f4   :  { %v120_v51 = vsel %vm119_vm4, %v106_v48, 0.0 }
 0x1f5   :  { %v206_v44 = vpop.eup %205 }
 0x1f6   :  { %v89_v45 = vmul.f32 0.6931472, %v206_v44  ;;  %v105_v49 = vpop.xlane.xlu1 %104 }
 0x1f8   :  { %v91_v47 = vadd.f32 %v89_v45, %v75_v32 }
 0x1fa   :  { %v107_v50 = vsub.f32 %v91_v47, %v105_v49 }
 0x1fc   :  { %v121_v52 = vsel %vm119_vm4, %v107_v50, 0.0 }
 0x1fd   :  { %v122_v53 = vadd.f32 %v121_v52, %v120_v51 }
 0x1ff   :  { %123 = vadd.xlane.f32.xlu1 %v122_v53 }
 0x272   :  { %v124_v54 = vpop.xlane.xlu1 %123 }
 0x273   :  { %v125_v55 = vrot.slane %v124_v54, 4 }
 0x275   :  { %v126_v56 = vadd.f32 %v125_v55, %v124_v54 }
 0x277   :  { %v127_v57 = vrot.slane %v126_v56, 2 }
 0x279   :  { %v128_v58 = vadd.f32 %v127_v57, %v126_v56 }
 0x27b   :  { %v129_v59 = vrot.slane %v128_v58, 1 }
 0x27d   :  { %v130_v60 = vadd.f32 %v129_v59, %v128_v58 }
 0x27f   :  { %187 = vpush %v130_v60 }
 0x2b0   :  { %s188_s29 = spop %187 }
 0x2b1   :  { %133 = sst [smem:[#allocation5]] %s188_s29 }
 0x2b2   :  { %155 = dma.smem_to_hbm %s253_s2, 16, %s153_s28, [#allocation4]  }
 0x2b3   :  { %243 = dma.done.wait [#allocation3], 256  }
 0x2b4   :  { %244 = vsyncadd [#allocation3], 4294967040 }
 0x2b5   :  { %245 = dma.done.wait [#allocation4], 16  }
 0x2b6   :  { %246 = vsyncadd [#allocation4], 4294967280 }
 0x2b7   :  { %164 = sfence }
 0x2b8   :  { %165 = vsyncpa [#allocation3], 1 }
 0x2b9   :  { %166 = vsyncpa [#allocation4], 1 }

</bundles_post_ra>
